<compile_context>
chip_gen: v6e
topology: v6e:2x2x1
jax: 0.10.0
libtpu: 0.0.40
codegen_flags: <defaults>
</compile_context>

<pallas_src>
import functools

import jax
import jax.numpy as jnp
from jax.experimental import pallas as pl
from jax.experimental.pallas import tpu as pltpu


def _pool_kernel(x_ref, o_ref, acc_ref, *, inv_s):
    k = pl.program_id(1)  # inner (spatial) reduction axis

    @pl.when(k == 0)
    def _():
        acc_ref[...] = jnp.zeros_like(acc_ref)

    # Pure elementwise (VPU) accumulate -- no per-step cross-lane reduce.
    acc_ref[...] += x_ref[...].astype(jnp.float32)

    @pl.when(k == pl.num_programs(1) - 1)
    def _():
        pooled = jnp.sum(acc_ref[...], axis=-1, keepdims=True) * inv_s
        o_ref[...] = pooled.astype(o_ref.dtype)


def _round_up(x, m):
    return pl.cdiv(x, m) * m


def pooler_forward(x, *, row_tile=256, max_spatial_block=2048):
    """x is a tuple/list; only x[0] (shape (N, C, D, H, W)) is used."""
    x0 = x[0]
    N, C, D, H, W = x0.shape
    S = D * H * W
    R = N * C

    x_flat = x0.reshape(R, S)

    # --- spatial tiling: pad S to a lane multiple, pick a large block that
    #     divides the padded extent (zero padding does not change the sum). ---
    S_pad = _round_up(S, 128)
    spatial_block = 128
    for cand in range(min(S_pad, max_spatial_block), 127, -128):
        if S_pad % cand == 0:
            spatial_block = cand
            break

    # --- row tiling: multiple of 8 sublanes; pad rows up to a tile multiple. ---
    row_tile = max(8, min(row_tile, _round_up(R, 8)))
    row_tile = _round_up(row_tile, 8)
    R_pad = _round_up(R, row_tile)

    if (R_pad != R) or (S_pad != S):
        x_flat = jnp.pad(x_flat, ((0, R_pad - R), (0, S_pad - S)))

    n_row_tiles = R_pad // row_tile
    n_blocks = S_pad // spatial_block

    kernel = functools.partial(_pool_kernel, inv_s=1.0 / float(S))

    out = pl.pallas_call(
        kernel,
        out_shape=jax.ShapeDtypeStruct((R_pad, 1), x0.dtype),
        grid_spec=pltpu.PrefetchScalarGridSpec(
            num_scalar_prefetch=0,
            grid=(n_row_tiles, n_blocks),
            in_specs=[
                pl.BlockSpec((row_tile, spatial_block), lambda r, k: (r, k)),
            ],
            out_specs=pl.BlockSpec((row_tile, 1), lambda r, k: (r, 0)),
            scratch_shapes=[pltpu.VMEM((row_tile, spatial_block), jnp.float32)],
        ),
        compiler_params=pltpu.CompilerParams(
            # Row tiles are independent -> shard across TensorCores;
            # spatial axis is the sequential reduction.
            dimension_semantics=("parallel", "arbitrary"),
            # Plenty of headroom for the ~(2 input buffers + f32 acc) plan,
            # while staying well under v7x's 64 MiB physical VMEM.
            vmem_limit_bytes=48 * 1024 * 1024,
        ),
    )(x_flat)

    return out[:R, 0].reshape(N, C)


if __name__ == "__main__":
    key = jax.random.PRNGKey(0)
    k0, k1, k2 = jax.random.split(key, 3)

    # Case 1: S divisible by 128 (fast path, no padding).
    N, C, D, H, W = 2, 4, 4, 8, 16  # S = 512, R = 8
    x0 = jax.random.normal(k0, (N, C, D, H, W), dtype=jnp.float32)
    x1 = jax.random.normal(k1, (N, C, D, H, W), dtype=jnp.float32)  # unused, mirrors x[0] indexing
    out = jax.block_until_ready(pooler_forward((x0, x1)))
    ref = jnp.mean(x0, axis=(2, 3, 4))
    assert out.shape == (N, C), out.shape
    assert jnp.allclose(out, ref, atol=1e-5, rtol=1e-5)

    # Case 2: ragged shapes (S and N*C not multiples of 128/8) -> padding path.
    N2, C2, D2, H2, W2 = 2, 10, 3, 7, 7  # S = 147, R = 20
    y0 = jax.random.normal(k2, (N2, C2, D2, H2, W2), dtype=jnp.float32)
    out2 = jax.block_until_ready(pooler_forward((y0,)))
    ref2 = jnp.mean(y0, axis=(2, 3, 4))
    assert out2.shape == (N2, C2), out2.shape
    assert jnp.allclose(out2, ref2, atol=1e-5, rtol=1e-5)

    print("KERNEL_OK")
</pallas_src>

<mosaic_0001>
module attributes {stable_mosaic.version = 11 : i64} {
  func.func @_pool_kernel(%arg0: i32, %arg1: i32, %arg2: memref<8x512xf32, #tpu.memory_space<vmem>>, %arg3: memref<8x1xf32, #tpu.memory_space<vmem>>, %arg4: memref<8x512xf32, #tpu.memory_space<vmem>>) attributes {dimension_semantics = [#tpu.dimension_semantics<parallel>, #tpu.dimension_semantics<arbitrary>], iteration_bounds = array<i64: 1, 1>, scalar_prefetch = 0 : i64, scratch_operands = 1 : i64, tpu.core_type = #tpu.core_type<tc>, window_params = [{transform_indices = @transform_0, window_bounds = array<i64: 8, 512>}, {transform_indices = @transform_1, window_bounds = array<i64: 8, 1>}]} {
    %c0_i32 = arith.constant 0 : i32
    %0 = arith.cmpi eq, %arg1, %c0_i32 : i32
    %1 = arith.extui %0 : i1 to i32
    %c0_i32_0 = arith.constant 0 : i32
    %2 = arith.cmpi ne, %1, %c0_i32_0 : i32
    scf.if %2 {
      %cst = arith.constant 0.000000e+00 : f32
      %10 = vector.broadcast %cst : f32 to vector<8x512xf32>
      %c0_8 = arith.constant 0 : index
      %c0_9 = arith.constant 0 : index
      %11 = vector.load %arg4[%c0_8, %c0_9] : memref<8x512xf32, #tpu.memory_space<vmem>>, vector<8x512xf32>
      tpu.vector_store %arg4[%c0_8, %c0_9], %10 {strides = array<i32>} : memref<8x512xf32, #tpu.memory_space<vmem>>, vector<8x512xf32>,
    } else {
    }
    %c0 = arith.constant 0 : index
    %c0_1 = arith.constant 0 : index
    %3 = vector.load %arg4[%c0, %c0_1] : memref<8x512xf32, #tpu.memory_space<vmem>>, vector<8x512xf32>
    %c0_2 = arith.constant 0 : index
    %c0_3 = arith.constant 0 : index
    %4 = vector.load %arg2[%c0_2, %c0_3] : memref<8x512xf32, #tpu.memory_space<vmem>>, vector<8x512xf32>
    %5 = arith.addf %3, %4 : vector<8x512xf32>
    %c0_4 = arith.constant 0 : index
    %c0_5 = arith.constant 0 : index
    %6 = vector.load %arg4[%c0_4, %c0_5] : memref<8x512xf32, #tpu.memory_space<vmem>>, vector<8x512xf32>
    tpu.vector_store %arg4[%c0_4, %c0_5], %5 {strides = array<i32>} : memref<8x512xf32, #tpu.memory_space<vmem>>, vector<8x512xf32>,
    %c0_i32_6 = arith.constant 0 : i32
    %7 = arith.cmpi eq, %arg1, %c0_i32_6 : i32
    %8 = arith.extui %7 : i1 to i32
    %c0_i32_7 = arith.constant 0 : i32
    %9 = arith.cmpi ne, %8, %c0_i32_7 : i32
    scf.if %9 {
      %c0_8 = arith.constant 0 : index
      %c0_9 = arith.constant 0 : index
      %10 = vector.load %arg4[%c0_8, %c0_9] : memref<8x512xf32, #tpu.memory_space<vmem>>, vector<8x512xf32>
      %cst = arith.constant dense<0.000000e+00> : vector<8xf32>
      %11 = vector.multi_reduction <add>, %10, %cst [1] : vector<8x512xf32> to vector<8xf32>
      %12 = vector.shape_cast %11 : vector<8xf32> to vector<8x1xf32>
      %cst_10 = arith.constant 0.001953125 : f32
      %13 = vector.broadcast %cst_10 : f32 to vector<8x1xf32>
      %14 = arith.mulf %12, %13 : vector<8x1xf32>
      %c0_11 = arith.constant 0 : index
      %c0_12 = arith.constant 0 : index
      %15 = vector.load %arg3[%c0_11, %c0_12] : memref<8x1xf32, #tpu.memory_space<vmem>>, vector<8x1xf32>
      tpu.vector_store %arg3[%c0_11, %c0_12], %14 {strides = array<i32>} : memref<8x1xf32, #tpu.memory_space<vmem>>, vector<8x1xf32>,
    } else {
    }
    return
  }
  func.func @transform_0(%arg0: i32, %arg1: i32) -> (i32, i32) {
    %c0_i32 = arith.constant 0 : i32
    return %arg0, %arg1 : i32, i32
  }
  func.func @transform_1(%arg0: i32, %arg1: i32) -> (i32, i32) {
    %c0_i32 = arith.constant 0 : i32
    %c0_i32_0 = arith.constant 0 : i32
    return %arg0, %c0_i32 : i32, i32
  }
}

</mosaic_0001>

<bundles_post_ra>
// kernel: tpu_custom_call.1
= control target key start
LH: loop header
LB: loop body
LE: loop exit
PB: predicated region body
PF: predicated region fallthrough
CT: control target
= control target key end

     0   :  { %6 = vsyncpa [#allocation4], 0  ;;  %s87_s6 = smov [#allocation3]   ;;  %s104_s0 = inlined_call_operand.hbm [shape: f32[8,512], index: 0, kind: input, shape index: {}]   ;;  %s105_s1 = inlined_call_operand.vmem [shape: f32[8,1], index: 1, kind: output, shape index: {}]  }
   0x1   :  { %s13_s7 = sshll.u32 %s87_s6, 4  ;;  %s14_s7 = int_to_ptr.vmem [resolvable:$true] %s13_s7 }
   0x2   :  { %s73_s8 = scalar_lea.vmem %s14_s7, 512  ;;  %p78_p1 = scmp.lt.s32.totalorder %s14_s7, %s14_s7 }
   0x3   :  { %p74_p0 = scmp.ne.s32.totalorder %s14_s7, %s73_s8  ;;  %p79_p2 = scmp.lt.s32.totalorder %s73_s8, %s73_s8 }
   0x5   :  { %p80_p3 = por %p79_p2, %p78_p1 }
   0x7   :  { %p81_p4 = pnand %p80_p3, %p74_p0 }
   0x9   :  { %84 = shalt.err (!%p81_p4)
}
   0xa   :  { %16 = dma.hbm_to_vmem [thread:$0]  %s104_s0, 512, %s14_s7, [#allocation4]  }
   0xb   :  { %85 = dma.done.wait [#allocation4], 512  }
   0xc   :  { %86 = vsyncadd [#allocation4], 4294966784  ;;  %v32_v0 = vld [vmem:[#allocation3] sm:$0xff]  ;;  %v33_v1 = vld [vmem:[#allocation3 + $0x8] sm:$0xff]  ;;  %vm57_vm0 = vcmask 7168  }
   0xd   :  { %v34_v2 = vld [vmem:[#allocation3 + $0x10] sm:$0xff]  ;;  %v51_v3 = vadd.f32 %v33_v1, %v32_v0  ;;  %v35_v4 = vld [vmem:[#allocation3 + $0x18] sm:$0xff] }
   0xf   :  { %v52_v5 = vadd.f32 %v51_v3, %v34_v2 }
  0x11   :  { %v53_v6 = vadd.f32 %v52_v5, %v35_v4 }
  0x13   :  { %54 = vadd.xlane.f32.xlu0 %v53_v6 }
  0x9c   :  { %v55_v7 = vpop.xlane.xlu0 %54 }
  0x9d   :  { %v56_v8 = vmul.f32 0.001953125, %v55_v7 }
  0x9f   :  { %58 = vst.msk [vmem:[%s105_s1] sm:$0xff] %vm57_vm0, %v56_v8 }
  0xa0   :  { %63 = vsyncpa [#allocation4], 1 }

</bundles_post_ra>
